<compile_context>
chip_gen: v5e
topology: v5e:2x2
jax: 0.10.0
libtpu: 0.0.40
codegen_flags: <defaults>
</compile_context>

<pallas_src>
import jax
import jax.numpy as jnp
from jax.experimental import pallas as pl
from jax.experimental.pallas import tpu as pltpu


def _patch_embed_kernel(a_ref, w_ref, b_ref, cls_ref, o_ref):
    """One block of `bt` images per grid step.

    a_ref:   (bt, N, K)     bf16 patches of the current image block
    w_ref:   (K, E)         bf16 flattened conv weight (VMEM-resident)
    b_ref:   (1, E)         f32 conv bias
    cls_ref: (1, E)         f32 CLS token
    o_ref:   (bt, 1+N, E)   out_dtype: row 0 = CLS, rows 1..N = patch embeds
    """
    bt, n, _ = a_ref.shape
    w = w_ref[...]
    bias = b_ref[...]
    cls_row = cls_ref[...].astype(o_ref.dtype)
    # Static unroll over the small per-step batch block: one rank-2 MXU GEMM
    # per image with explicit f32 accumulation; bias add fused in the epilogue.
    for t in range(bt):
        acc = jnp.dot(a_ref[t], w, preferred_element_type=jnp.float32)
        o_ref[t, 0:1, :] = cls_row
        # TODO(synk): rows 1..N start one sublane into an (8,128) tile, so this
        # store is shifted/masked; see 8-aligned-layout TODO in the header.
        o_ref[t, pl.ds(1, n), :] = (acc + bias).astype(o_ref.dtype)


def _pick_batch_block(batch):
    """Largest Bt in {8,4,2} dividing `batch` that still leaves >=4 grid steps."""
    for cand in (8, 4, 2):
        if batch % cand == 0 and batch // cand >= 4:
            return cand
    return 1


def patch_embedding_forward(x, conv_w, conv_b, cls_tok, patch_size,
                            compute_dtype=jnp.bfloat16,
                            out_dtype=jnp.float32):
    """x: (B, C, H, W), conv_w: (E, C, P, P), conv_b: (E,), cls_tok: (1, 1, E).

    Returns (B, 1 + (H//P)*(W//P), E) in `out_dtype`, CLS token at position 0.
    Pass out_dtype=jnp.bfloat16 when the downstream block accepts it: the f32
    output stream is otherwise the largest HBM stream of this kernel.
    """
    B, C, H, W = x.shape
    E = conv_w.shape[0]
    P = patch_size
    Hp, Wp = H // P, W // P
    N = Hp * Wp
    K = C * P * P

    # --- glue: patchify in the compute dtype (pure reshape/transpose).
    # allow_input_fusion on operand 0 (below) lets XLA fuse this producer into
    # the pallas_call input instead of materializing `patches` in HBM.
    # (B, C, Hp, P, Wp, P) -> (B, Hp, Wp, C, P, P) -> (B, N, K), K-order (c,ph,pw)
    xc = x.astype(compute_dtype)
    patches = xc.reshape(B, C, Hp, P, Wp, P)
    patches = patches.transpose(0, 2, 4, 1, 3, 5).reshape(B, N, K)

    # --- glue: flatten conv weight to GEMM form (K, E), bias / CLS to (1, E) ---
    w2d = conv_w.reshape(E, K).T.astype(compute_dtype)
    b2d = conv_b.reshape(1, E).astype(jnp.float32)
    cls2d = cls_tok.reshape(1, E).astype(jnp.float32)

    # Batch blocking: several images per grid step amortize the fixed per-step
    # pipeline overhead; Bt is capped at 8 so double-buffered in/out blocks
    # plus the resident weight stay well inside the 32 MiB scoped VMEM limit
    # on every generation (incl. v7x's 64 MiB physical VMEM).
    bt = _pick_batch_block(B)

    return pl.pallas_call(
        _patch_embed_kernel,
        out_shape=jax.ShapeDtypeStruct((B, 1 + N, E), out_dtype),
        grid=(B // bt,),
        in_specs=[
            # per-step image block
            pl.BlockSpec((bt, N, K), lambda b: (b, 0, 0)),
            # weight / bias / CLS: constant index_maps -> DMA'd once, resident.
            pl.BlockSpec((K, E), lambda b: (0, 0)),
            pl.BlockSpec((1, E), lambda b: (0, 0)),
            pl.BlockSpec((1, E), lambda b: (0, 0)),
        ],
        out_specs=pl.BlockSpec((bt, 1 + N, E), lambda b: (b, 0, 0)),
        compiler_params=pltpu.CompilerParams(
            # Batch-block axis is embarrassingly parallel -> megacore-shard it
            # on v7x (verify in a trace; switch to pltpu.CORE_PARALLEL if one
            # TensorCore sits idle). No-op on single-TC v5e/v6e.
            dimension_semantics=("parallel",),
            # Explicit limit: v5e's scoped default is only 16 MiB; 32 MiB is
            # safe for Bt<=8 at ViT-B scale on every generation.
            vmem_limit_bytes=32 * 1024 * 1024,
            # Allow XLA to fuse the patchify producer into operand 0 instead of
            # materializing it in HBM (kernel is HBM-bandwidth bound).
            allow_input_fusion=[True, False, False, False],
        ),
    )(patches, w2d, b2d, cls2d)


def _reference_forward(x, conv_w, conv_b, cls_tok, patch_size):
    """Pure-JAX reference (lax conv) for correctness check."""
    y = jax.lax.conv_general_dilated(
        x, conv_w, window_strides=(patch_size, patch_size), padding="VALID",
        dimension_numbers=("NCHW", "OIHW", "NCHW"),
        precision=jax.lax.Precision.HIGHEST)
    y = y + conv_b.reshape(1, -1, 1, 1)
    B, E, Hp, Wp = y.shape
    y = y.reshape(B, E, Hp * Wp).transpose(0, 2, 1)
    cls = jnp.broadcast_to(cls_tok.reshape(1, 1, E), (B, 1, E))
    return jnp.concatenate([cls, y], axis=1)


if __name__ == "__main__":
    # Small shapes consistent with the module: img_size=16, patch=4, C=4, E=32.
    # (E=32 < 128 lanes is inherent to the toy config; real ViT sizes E=768,
    #  N=196 map onto full MXU/lane tiles with the same kernel.)
    B, C, IMG, P, E = 2, 4, 16, 4, 32

    key = jax.random.PRNGKey(0)
    kw, kc, kx = jax.random.split(key, 3)

    # Deterministic parameter init mirroring the module's __init__:
    #   trunc_normal(std=0.02) for conv weight and CLS, zeros for bias.
    conv_w = 0.02 * jax.random.truncated_normal(kw, -2.0, 2.0, (E, C, P, P),
                                                dtype=jnp.float32)
    conv_b = jnp.zeros((E,), dtype=jnp.float32)
    cls_tok = 0.02 * jax.random.truncated_normal(kc, -2.0, 2.0, (1, 1, E),
                                                 dtype=jnp.float32)

    x = jax.random.normal(kx, (B, C, IMG, IMG), dtype=jnp.float32)

    out = patch_embedding_forward(x, conv_w, conv_b, cls_tok, P)
    out = jax.block_until_ready(out)

    N = (IMG // P) ** 2
    assert out.shape == (B, 1 + N, E), out.shape
    assert out.dtype == jnp.float32

    # Strict check: reference evaluated on the same bf16-rounded inputs
    # (products are exact in f32; only accumulation order differs).
    ref_bf16_in = _reference_forward(
        x.astype(jnp.bfloat16).astype(jnp.float32),
        conv_w.astype(jnp.bfloat16).astype(jnp.float32),
        conv_b, cls_tok, P)
    assert jnp.allclose(out, ref_bf16_in, atol=1e-4, rtol=1e-4), \
        "mismatch vs bf16-input reference"

    # Loose sanity check vs the full-precision fp32 reference.
    ref_fp32 = _reference_forward(x, conv_w, conv_b, cls_tok, P)
    assert jnp.allclose(out, ref_fp32, atol=5e-2, rtol=5e-2), \
        "mismatch vs fp32 reference"

    # bf16-output variant (for downstream blocks that accept bf16 activations).
    out_bf16 = patch_embedding_forward(x, conv_w, conv_b, cls_tok, P,
                                       out_dtype=jnp.bfloat16)
    out_bf16 = jax.block_until_ready(out_bf16)
    assert out_bf16.shape == (B, 1 + N, E)
    assert out_bf16.dtype == jnp.bfloat16
    assert jnp.allclose(out_bf16.astype(jnp.float32), out,
                        atol=1e-2, rtol=1e-2), "bf16 output mismatch"

    print("KERNEL_OK")
</pallas_src>

<mosaic_0001>
module attributes {stable_mosaic.version = 11 : i64} {
  func.func @_patch_embed_kernel(%arg0: i32, %arg1: memref<1x16x64xbf16, #tpu.memory_space<vmem>>, %arg2: memref<64x32xbf16, #tpu.memory_space<vmem>>, %arg3: memref<1x32xf32, #tpu.memory_space<vmem>>, %arg4: memref<1x32xf32, #tpu.memory_space<vmem>>, %arg5: memref<1x17x32xf32, #tpu.memory_space<vmem>>) attributes {dimension_semantics = [#tpu.dimension_semantics<parallel>], iteration_bounds = array<i64: 2>, scalar_prefetch = 0 : i64, scratch_operands = 0 : i64, tpu.core_type = #tpu.core_type<tc>, window_params = [{transform_indices = @transform_0, window_bounds = array<i64: 1, 16, 64>}, {pipeline_mode = #tpu.pipeline_mode<synchronous>, transform_indices = @transform_1, window_bounds = array<i64: 64, 32>}, {pipeline_mode = #tpu.pipeline_mode<synchronous>, transform_indices = @transform_2, window_bounds = array<i64: 1, 32>}, {pipeline_mode = #tpu.pipeline_mode<synchronous>, transform_indices = @transform_3, window_bounds = array<i64: 1, 32>}, {transform_indices = @transform_4, window_bounds = array<i64: 1, 17, 32>}]} {
    %c0 = arith.constant 0 : index
    %c0_0 = arith.constant 0 : index
    %0 = vector.load %arg2[%c0, %c0_0] : memref<64x32xbf16, #tpu.memory_space<vmem>>, vector<64x32xbf16>
    %c0_1 = arith.constant 0 : index
    %c0_2 = arith.constant 0 : index
    %1 = vector.load %arg3[%c0_1, %c0_2] : memref<1x32xf32, #tpu.memory_space<vmem>>, vector<1x32xf32>
    %c0_3 = arith.constant 0 : index
    %c0_4 = arith.constant 0 : index
    %2 = vector.load %arg4[%c0_3, %c0_4] : memref<1x32xf32, #tpu.memory_space<vmem>>, vector<1x32xf32>
    %c0_5 = arith.constant 0 : index
    %c0_6 = arith.constant 0 : index
    %c0_7 = arith.constant 0 : index
    %3 = vector.load %arg1[%c0_5, %c0_6, %c0_7] : memref<1x16x64xbf16, #tpu.memory_space<vmem>>, vector<1x16x64xbf16>
    %4 = vector.shape_cast %3 : vector<1x16x64xbf16> to vector<16x64xbf16>
    %cst = arith.constant dense<0.000000e+00> : vector<16x32xf32>
    %5 = tpu.matmul %4, %0, %cst {dimension_numbers = #tpu.dot_dimension_numbers<[1], [0], [0], [1], [0, 0, 1, 1], [], []>} : vector<16x64xbf16>, vector<64x32xbf16>, vector<16x32xf32> -> vector<16x32xf32>
    %c0_8 = arith.constant 0 : index
    %c0_9 = arith.constant 0 : index
    %c0_10 = arith.constant 0 : index
    %6 = vector.load %arg5[%c0_8, %c0_9, %c0_10] : memref<1x17x32xf32, #tpu.memory_space<vmem>>, vector<1x1x32xf32>
    %7 = vector.shape_cast %6 : vector<1x1x32xf32> to vector<1x32xf32>
    %8 = vector.shape_cast %2 : vector<1x32xf32> to vector<1x1x32xf32>
    tpu.vector_store %arg5[%c0_8, %c0_9, %c0_10], %8 {strides = array<i32>} : memref<1x17x32xf32, #tpu.memory_space<vmem>>, vector<1x1x32xf32>,
    %9 = vector.broadcast %1 : vector<1x32xf32> to vector<16x32xf32>
    %10 = arith.addf %5, %9 : vector<16x32xf32>
    %c0_11 = arith.constant 0 : index
    %c1 = arith.constant 1 : index
    %c0_12 = arith.constant 0 : index
    %11 = vector.load %arg5[%c0_11, %c1, %c0_12] : memref<1x17x32xf32, #tpu.memory_space<vmem>>, vector<1x16x32xf32>
    %12 = vector.shape_cast %11 : vector<1x16x32xf32> to vector<16x32xf32>
    %13 = vector.shape_cast %10 : vector<16x32xf32> to vector<1x16x32xf32>
    tpu.vector_store %arg5[%c0_11, %c1, %c0_12], %13 {strides = array<i32>} : memref<1x17x32xf32, #tpu.memory_space<vmem>>, vector<1x16x32xf32>,
    return
  }
  func.func @transform_0(%arg0: i32) -> (i32, i32, i32) {
    %c0_i32 = arith.constant 0 : i32
    %c0_i32_0 = arith.constant 0 : i32
    %c0_i32_1 = arith.constant 0 : i32
    return %arg0, %c0_i32, %c0_i32_0 : i32, i32, i32
  }
  func.func @transform_1(%arg0: i32) -> (i32, i32) {
    %c0_i32 = arith.constant 0 : i32
    %c0_i32_0 = arith.constant 0 : i32
    %c0_i32_1 = arith.constant 0 : i32
    return %c0_i32, %c0_i32_0 : i32, i32
  }
  func.func @transform_2(%arg0: i32) -> (i32, i32) {
    %c0_i32 = arith.constant 0 : i32
    %c0_i32_0 = arith.constant 0 : i32
    %c0_i32_1 = arith.constant 0 : i32
    return %c0_i32, %c0_i32_0 : i32, i32
  }
  func.func @transform_3(%arg0: i32) -> (i32, i32) {
    %c0_i32 = arith.constant 0 : i32
    %c0_i32_0 = arith.constant 0 : i32
    %c0_i32_1 = arith.constant 0 : i32
    return %c0_i32, %c0_i32_0 : i32, i32
  }
  func.func @transform_4(%arg0: i32) -> (i32, i32, i32) {
    %c0_i32 = arith.constant 0 : i32
    %c0_i32_0 = arith.constant 0 : i32
    %c0_i32_1 = arith.constant 0 : i32
    return %arg0, %c0_i32, %c0_i32_0 : i32, i32, i32
  }
}

</mosaic_0001>

<bundles_post_ra>
// kernel: tpu_custom_call.1
= control target key start
LH: loop header
LB: loop body
LE: loop exit
PB: predicated region body
PF: predicated region fallthrough
CT: control target
= control target key end

     0   :  { %s400_s15 = smov 0   ;;  %s435_s0 = inlined_call_operand.vmem [shape: bf16[2,16,64], index: 0, kind: input, shape index: {}]   ;;  %s436_s1 = inlined_call_operand.vmem [shape: bf16[64,32], index: 1, kind: input, shape index: {}]   ;;  %s437_s2 = inlined_call_operand.vmem [shape: f32[1,32], index: 2, kind: input, shape index: {}]   ;;  %s438_s3 = inlined_call_operand.vmem [shape: f32[1,32], index: 3, kind: input, shape index: {}]   ;;  %s439_s4 = inlined_call_operand.vmem [shape: f32[2,17,32], index: 4, kind: output, shape index: {}]  }
   0x1 LB: > { %s321_s16 = sadd.s32 4294967295, %s373_s15   ;;  %p325_p0 = scmp.ge.s32.totalorder %s373_s15, 1  ;;  %s373_s15 = sphi %s400_s15, %s14_s15  }
   0x2   : > { %p162_p1 = scmp.lt.s32.totalorder %s373_s15, 3 }
   0x4   : > { %p163_p2 = pnand %p325_p0, %p162_p1 }
   0x5   : > { %p188_p3 = scmp.lt.s32.totalorder (!%p163_p2), %s321_s16, 1 }
   0x6   : > { %166 = sbr.rel (%p163_p2) target bundleno = 164 (0xa4), region = 36 }
   0xb   : > { %v356_v0 = vld [vmem:[%s436_s1 + $0x18] sm:$0xff]  ;;  %v355_v1 = vld [vmem:[%s436_s1 + $0x10] sm:$0xff]  ;;  %s441_s16 = smov (!%p188_p3, %s321_s16), 1  ;;  %v208_v2 = vld [vmem:[%s438_s3] sm:$0x1]  ;;  %vm211_vm0 = vcmask 253952  }
   0xc   : > { %253 = vmatpush.bf16.msra.mxu0 %v356_v0  ;;  %s358_s21 = smul.u32 24, %s441_s16  ;;  %v354_v3 = vld [vmem:[%s436_s1 + $0x8] sm:$0xff]  ;;  %s352_s29 = sshll.u32 %s441_s16, 3  ;;  %v353_v4 = vld [vmem:[%s436_s1] sm:$0xff]  ;;  %vm245_vm1 = vcmask 523264   ;;  %vm263_vm2 = vcmask 261120  }
   0xd   : > { %s192_s8 = scalar_lea.vmem %s435_s0, %s352_s29  ;;  %v207_v6 = vld [vmem:[%s437_s2] sm:$0x1] }
   0xe   : > { %s197_s28 = scalar_lea.vmem %s439_s4, %s358_s21  ;;  %v357_v5 = vld [vmem:[%s192_s8] sm:$0xff]  ;;  %v214_v7 = vperm.slane %v207_v6, 0 }
   0xf   : > { %212 = vst.msk [vmem:[%s197_s28] sm:$0x1] %vm211_vm0, %v208_v2 }
  0x10   : > { %254 = vmatpush.bf16.msra.mxu0 %v355_v1 }
  0x14   : > { %255 = vmatpush.bf16.msra.mxu0 %v354_v3 }
  0x18   : > { %256 = vmatpush.bf16.msra.mxu0 %v353_v4 }
  0x1b   : > { %349 = vmatmul.msk.bf16.vlgmr.msra.gmra.mxu0 %vm245_vm1, %v357_v5 }
  0x98   : > { %v258_v8 = vpop.f32.mrf.mxu0 }
  0x99   : > { %v259_v9 = vadd.f32 %v258_v8, %v214_v7 }
  0x9b   : > { %264 = vst.msk [vmem:[%s197_s28 + $0x1] sm:$0xff] %vm263_vm2, %v259_v9 }
  0xa0   : > { %v260_v10 = vpop.f32.mrf.mxu0 }
  0xa1   : > { %v261_v11 = vadd.f32 %v260_v10, %v214_v7 }
  0xa3   : > { %265 = vst.msk [vmem:[%s197_s28 + $0x9] sm:$0xff] %vm263_vm2, %v261_v11 }
  0xa4 PF: > { %s14_s15 = sadd.s32 1, %s373_s15  }
  0xa5   : > { %p11_p4 = scmp.ge.s32.totalorder %s14_s15, 4  }
  0xa7   :  { %13 = sbr.rel (!%p11_p4) target bundleno = 1 (0x1), region = 66 }

</bundles_post_ra>
